<compile_context>
chip_gen: v7x
topology: tpu7x:2x2x1
jax: 0.10.0
libtpu: 0.0.40
codegen_flags: <defaults>
</compile_context>

<pallas_src>
import functools

import jax
import jax.numpy as jnp
from jax import lax
from jax.experimental import pallas as pl
from jax.experimental.pallas import tpu as pltpu


# ----------------------------- kernel ----------------------------------------

def _dprnn_kernel(seed_ref,                     # SMEM scalar prefetch: [1] int32
                  x_ref,                        # [tb, in]   f32
                  w1_ref, b1_ref,               # [in, emb], [1, emb]
                  w2_ref, b2_ref,               # [emb, emb], [1, emb]
                  w3t_ref, b3_ref,              # [out, emb], [1, out]
                  o_ref,                        # [1, tb] if out==1 else [tb, out]
                  *, dropout_p, tb, in_is_1, out_is_1):
    x = x_ref[...]

    # ---- layer 1: Linear(in -> emb) + ReLU -----------------------------------
    if in_is_1:
        # K == 1: outer product == broadcast multiply on the VPU (skip MXU).
        h1 = x * w1_ref[...] + b1_ref[...]
    else:
        h1 = jnp.dot(x, w1_ref[...], preferred_element_type=jnp.float32) + b1_ref[...]
    h1 = jnp.maximum(h1, 0.0)

    # ---- layer 2: Linear(emb -> emb) + ReLU  (the only MXU matmul) -----------
    h2 = jnp.dot(h1, w2_ref[...], preferred_element_type=jnp.float32) + b2_ref[...]
    h2 = jnp.maximum(h2, 0.0)

    # ---- dropout(p): counter hash -> uint32 threshold compare ----------------
    if dropout_p > 0.0:
        shape = h2.shape
        rows = lax.broadcasted_iota(jnp.int32, shape, 0) + pl.program_id(0) * tb
        cols = lax.broadcasted_iota(jnp.int32, shape, 1)
        mix = (rows * 65539 + cols * 40503 + seed_ref[0]).astype(jnp.uint32)
        # murmur3 fmix32 finalizer
        mix = mix ^ (mix >> 16)
        mix = mix * jnp.uint32(0x85EBCA6B)
        mix = mix ^ (mix >> 13)
        mix = mix * jnp.uint32(0xC2B2AE35)
        mix = mix ^ (mix >> 16)
        thresh = jnp.uint32(min(int(round(dropout_p * 2.0 ** 32)), 2 ** 32 - 1))
        keep = mix >= thresh                      # P(keep) == 1 - p
        h2 = jnp.where(keep, h2 * (1.0 / (1.0 - dropout_p)), 0.0)

    # ---- layer 3: Linear(emb -> out) -----------------------------------------
    if out_is_1:
        # N == 1: elementwise multiply + lane reduction; lane-dense [1, tb] store.
        row = jnp.sum(h2 * w3t_ref[...], axis=-1).reshape(1, tb)
        o_ref[...] = row + b3_ref[...]
    else:
        o = lax.dot_general(h2, w3t_ref[...], (((1,), (1,)), ((), ())),
                            preferred_element_type=jnp.float32)
        o_ref[...] = o + b3_ref[...]


# ----------------------------- wrapper ----------------------------------------

def _round_up(n, m):
    return -(-n // m) * m


def dprnn_forward(x, params, seed, *, dropout_p=0.5, tb_max=256):
    """Forward pass.  x: [B, input_size] f32 -> [B, output_size] f32.

    Dropout is active (training / MC-dropout mode, matching the module's
    predict()).  Pass a different `seed` per call for fresh dropout masks.
    """
    if not (0.0 <= float(dropout_p) < 1.0):
        raise ValueError("dropout_p must be in [0, 1).")

    w1, b1, w2, b2, w3t, b3 = params
    B, in_dim = x.shape
    emb = w1.shape[1]
    out_dim = w3t.shape[0]

    # Batch tiling: one grid step for small batches, 256-row tiles otherwise.
    if B <= tb_max:
        tb = _round_up(B, 8)
    else:
        tb = tb_max                               # multiple of 128
    b_pad = _round_up(B, tb)
    if b_pad != B:
        x = jnp.pad(x, ((0, b_pad - B), (0, 0)))

    out_is_1 = (out_dim == 1)
    if out_is_1:
        out_shape = jax.ShapeDtypeStruct((1, b_pad), jnp.float32)
        out_spec = pl.BlockSpec((1, tb), lambda i, s: (0, i))
    else:
        out_shape = jax.ShapeDtypeStruct((b_pad, out_dim), jnp.float32)
        out_spec = pl.BlockSpec((tb, out_dim), lambda i, s: (i, 0))

    kernel = functools.partial(
        _dprnn_kernel, dropout_p=float(dropout_p), tb=tb,
        in_is_1=(in_dim == 1), out_is_1=out_is_1)

    grid_spec = pltpu.PrefetchScalarGridSpec(
        num_scalar_prefetch=1,                    # seed -> SMEM
        grid=(b_pad // tb,),
        in_specs=[
            pl.BlockSpec((tb, in_dim),   lambda i, s: (i, 0)),   # x tile
            pl.BlockSpec((in_dim, emb),  lambda i, s: (0, 0)),   # w1 (whole)
            pl.BlockSpec((1, emb),       lambda i, s: (0, 0)),   # b1
            pl.BlockSpec((emb, emb),     lambda i, s: (0, 0)),   # w2
            pl.BlockSpec((1, emb),       lambda i, s: (0, 0)),   # b2
            pl.BlockSpec((out_dim, emb), lambda i, s: (0, 0)),   # w3 (torch layout)
            pl.BlockSpec((1, out_dim),   lambda i, s: (0, 0)),   # b3
        ],
        out_specs=out_spec,
    )

    seed_arr = jnp.asarray(seed, dtype=jnp.int32).reshape((1,))

    out = pl.pallas_call(
        kernel,
        out_shape=out_shape,
        grid_spec=grid_spec,
        compiler_params=pltpu.CompilerParams(
            # Tiles are independent (randomness is a pure function of
            # program_id), so the batch axis can shard across v7x's two TCs.
            dimension_semantics=("parallel",)),
    )(seed_arr, x, w1, b1, w2, b2, w3t, b3)

    if out_is_1:
        out = out.reshape(b_pad, 1)
    return out[:B]                                # == torch `out.view(-1, out)`


# ------------------------- deterministic params --------------------------------

def init_params(key, input_size, embedding_size, output_size):
    """PyTorch nn.Linear-style U(-1/sqrt(fan_in), 1/sqrt(fan_in)) init."""
    def linear(k, fan_in, fan_out, transposed=False):
        kw, kb = jax.random.split(k)
        bound = 1.0 / float(fan_in) ** 0.5
        shape = (fan_out, fan_in) if transposed else (fan_in, fan_out)
        w = jax.random.uniform(kw, shape, jnp.float32, -bound, bound)
        b = jax.random.uniform(kb, (1, fan_out), jnp.float32, -bound, bound)
        return w, b

    k1, k2, k3 = jax.random.split(key, 3)
    w1, b1 = linear(k1, input_size, embedding_size)              # [in, emb]
    w2, b2 = linear(k2, embedding_size, embedding_size)          # [emb, emb]
    w3t, b3 = linear(k3, embedding_size, output_size, True)      # [out, emb]
    return (w1, b1, w2, b2, w3t, b3)


# --------------------------------- main ----------------------------------------

if __name__ == "__main__":
    input_size = 1
    embedding_size = 64
    output_size = 1
    dropout_prob = 0.5
    batch = 32

    key = jax.random.PRNGKey(0)
    kx, kp = jax.random.split(key)

    x = jax.random.normal(kx, (batch, input_size), dtype=jnp.float32)
    params = init_params(kp, input_size, embedding_size, output_size)

    out = dprnn_forward(x, params, seed=1234, dropout_p=dropout_prob)
    jax.block_until_ready(out)

    assert out.shape == (batch, output_size)
    assert out.dtype == jnp.float32
    assert bool(jnp.all(jnp.isfinite(out)))
    print("KERNEL_OK")
</pallas_src>

<mosaic_0001>
module attributes {stable_mosaic.version = 11 : i64} {
  func.func @_dprnn_kernel(%arg0: i32, %arg1: memref<1xi32, #tpu.memory_space<smem>>, %arg2: memref<32x1xf32, #tpu.memory_space<vmem>>, %arg3: memref<1x64xf32, #tpu.memory_space<vmem>>, %arg4: memref<1x64xf32, #tpu.memory_space<vmem>>, %arg5: memref<64x64xf32, #tpu.memory_space<vmem>>, %arg6: memref<1x64xf32, #tpu.memory_space<vmem>>, %arg7: memref<1x64xf32, #tpu.memory_space<vmem>>, %arg8: memref<1x1xf32, #tpu.memory_space<vmem>>, %arg9: memref<1x32xf32, #tpu.memory_space<vmem>>) attributes {dimension_semantics = [#tpu.dimension_semantics<parallel>], iteration_bounds = array<i64: 1>, scalar_prefetch = 1 : i64, scratch_operands = 0 : i64, tpu.core_type = #tpu.core_type<tc>, window_params = [{transform_indices = @transform_0, window_bounds = array<i64: 32, 1>}, {pipeline_mode = #tpu.pipeline_mode<synchronous>, transform_indices = @transform_1, window_bounds = array<i64: 1, 64>}, {pipeline_mode = #tpu.pipeline_mode<synchronous>, transform_indices = @transform_2, window_bounds = array<i64: 1, 64>}, {pipeline_mode = #tpu.pipeline_mode<synchronous>, transform_indices = @transform_3, window_bounds = array<i64: 64, 64>}, {pipeline_mode = #tpu.pipeline_mode<synchronous>, transform_indices = @transform_4, window_bounds = array<i64: 1, 64>}, {pipeline_mode = #tpu.pipeline_mode<synchronous>, transform_indices = @transform_5, window_bounds = array<i64: 1, 64>}, {pipeline_mode = #tpu.pipeline_mode<synchronous>, transform_indices = @transform_6, window_bounds = array<i64: 1, 1>}, {transform_indices = @transform_7, window_bounds = array<i64: 1, 32>}]} {
    %c0 = arith.constant 0 : index
    %c0_0 = arith.constant 0 : index
    %0 = vector.load %arg2[%c0, %c0_0] : memref<32x1xf32, #tpu.memory_space<vmem>>, vector<32x1xf32>
    %c0_1 = arith.constant 0 : index
    %c0_2 = arith.constant 0 : index
    %1 = vector.load %arg3[%c0_1, %c0_2] : memref<1x64xf32, #tpu.memory_space<vmem>>, vector<1x64xf32>
    %2 = vector.broadcast %0 : vector<32x1xf32> to vector<32x64xf32>
    %3 = vector.broadcast %1 : vector<1x64xf32> to vector<32x64xf32>
    %4 = arith.mulf %2, %3 : vector<32x64xf32>
    %c0_3 = arith.constant 0 : index
    %c0_4 = arith.constant 0 : index
    %5 = vector.load %arg4[%c0_3, %c0_4] : memref<1x64xf32, #tpu.memory_space<vmem>>, vector<1x64xf32>
    %6 = vector.broadcast %5 : vector<1x64xf32> to vector<32x64xf32>
    %7 = arith.addf %4, %6 : vector<32x64xf32>
    %cst = arith.constant 0.000000e+00 : f32
    %8 = vector.broadcast %cst : f32 to vector<32x64xf32>
    %9 = arith.maximumf %7, %8 : vector<32x64xf32>
    %c0_5 = arith.constant 0 : index
    %c0_6 = arith.constant 0 : index
    %10 = vector.load %arg5[%c0_5, %c0_6] : memref<64x64xf32, #tpu.memory_space<vmem>>, vector<64x64xf32>
    %cst_7 = arith.constant dense<0.000000e+00> : vector<32x64xf32>
    %11 = tpu.matmul %9, %10, %cst_7 {dimension_numbers = #tpu.dot_dimension_numbers<[1], [0], [0], [1], [0, 0, 1, 1], [], []>} : vector<32x64xf32>, vector<64x64xf32>, vector<32x64xf32> -> vector<32x64xf32>
    %c0_8 = arith.constant 0 : index
    %c0_9 = arith.constant 0 : index
    %12 = vector.load %arg6[%c0_8, %c0_9] : memref<1x64xf32, #tpu.memory_space<vmem>>, vector<1x64xf32>
    %13 = vector.broadcast %12 : vector<1x64xf32> to vector<32x64xf32>
    %14 = arith.addf %11, %13 : vector<32x64xf32>
    %cst_10 = arith.constant 0.000000e+00 : f32
    %15 = vector.broadcast %cst_10 : f32 to vector<32x64xf32>
    %16 = arith.maximumf %14, %15 : vector<32x64xf32>
    %17 = tpu.iota {dimensions = array<i32: 0>} : vector<32x64xi32>
    %c32_i32 = arith.constant 32 : i32
    %18 = arith.muli %arg0, %c32_i32 : i32
    %19 = vector.broadcast %18 : i32 to vector<32x64xi32>
    %20 = arith.addi %17, %19 : vector<32x64xi32>
    %21 = tpu.iota {dimensions = array<i32: 1>} : vector<32x64xi32>
    %c65539_i32 = arith.constant 65539 : i32
    %22 = vector.broadcast %c65539_i32 : i32 to vector<32x64xi32>
    %23 = arith.muli %20, %22 : vector<32x64xi32>
    %c40503_i32 = arith.constant 40503 : i32
    %24 = vector.broadcast %c40503_i32 : i32 to vector<32x64xi32>
    %25 = arith.muli %21, %24 : vector<32x64xi32>
    %26 = arith.addi %23, %25 : vector<32x64xi32>
    %c0_11 = arith.constant 0 : index
    %27 = memref.load %arg1[%c0_11] : memref<1xi32, #tpu.memory_space<smem>>
    %28 = vector.broadcast %27 : i32 to vector<32x64xi32>
    %29 = arith.addi %26, %28 : vector<32x64xi32>
    %c16_i32 = arith.constant 16 : i32
    %30 = vector.broadcast %c16_i32 : i32 to vector<32x64xi32>
    %31 = arith.shrui %29, %30 : vector<32x64xi32>
    %32 = arith.xori %29, %31 : vector<32x64xi32>
    %c-2048144789_i32 = arith.constant -2048144789 : i32
    %33 = vector.broadcast %c-2048144789_i32 : i32 to vector<32x64xi32>
    %34 = arith.muli %32, %33 : vector<32x64xi32>
    %c13_i32 = arith.constant 13 : i32
    %35 = vector.broadcast %c13_i32 : i32 to vector<32x64xi32>
    %36 = arith.shrui %34, %35 : vector<32x64xi32>
    %37 = arith.xori %34, %36 : vector<32x64xi32>
    %c-1028477387_i32 = arith.constant -1028477387 : i32
    %38 = vector.broadcast %c-1028477387_i32 : i32 to vector<32x64xi32>
    %39 = arith.muli %37, %38 : vector<32x64xi32>
    %c16_i32_12 = arith.constant 16 : i32
    %40 = vector.broadcast %c16_i32_12 : i32 to vector<32x64xi32>
    %41 = arith.shrui %39, %40 : vector<32x64xi32>
    %42 = arith.xori %39, %41 : vector<32x64xi32>
    %c-2147483648_i32 = arith.constant -2147483648 : i32
    %43 = vector.broadcast %c-2147483648_i32 : i32 to vector<32x64xi32>
    %44 = arith.cmpi uge, %42, %43 : vector<32x64xi32>
    %cst_13 = arith.constant 2.000000e+00 : f32
    %45 = vector.broadcast %cst_13 : f32 to vector<32x64xf32>
    %46 = arith.mulf %16, %45 : vector<32x64xf32>
    %cst_14 = arith.constant 0.000000e+00 : f32
    %47 = vector.broadcast %cst_14 : f32 to vector<32x64xf32>
    %48 = arith.select %44, %46, %47 : vector<32x64xi1>, vector<32x64xf32>
    %c0_15 = arith.constant 0 : index
    %c0_16 = arith.constant 0 : index
    %49 = vector.load %arg7[%c0_15, %c0_16] : memref<1x64xf32, #tpu.memory_space<vmem>>, vector<1x64xf32>
    %50 = vector.broadcast %49 : vector<1x64xf32> to vector<32x64xf32>
    %51 = arith.mulf %48, %50 : vector<32x64xf32>
    %cst_17 = arith.constant dense<0.000000e+00> : vector<32xf32>
    %52 = vector.multi_reduction <add>, %51, %cst_17 [1] : vector<32x64xf32> to vector<32xf32>
    %53 = vector.shape_cast %52 : vector<32xf32> to vector<1x32xf32>
    %c0_18 = arith.constant 0 : index
    %c0_19 = arith.constant 0 : index
    %54 = vector.load %arg8[%c0_18, %c0_19] : memref<1x1xf32, #tpu.memory_space<vmem>>, vector<1x1xf32>
    %55 = vector.broadcast %54 : vector<1x1xf32> to vector<1x32xf32>
    %56 = arith.addf %53, %55 : vector<1x32xf32>
    %c0_20 = arith.constant 0 : index
    %c0_21 = arith.constant 0 : index
    %57 = vector.load %arg9[%c0_20, %c0_21] : memref<1x32xf32, #tpu.memory_space<vmem>>, vector<1x32xf32>
    tpu.vector_store %arg9[%c0_20, %c0_21], %56 {strides = array<i32>} : memref<1x32xf32, #tpu.memory_space<vmem>>, vector<1x32xf32>,
    return
  }
  func.func @transform_0(%arg0: i32, %arg1: memref<1xi32, #tpu.memory_space<smem>>) -> (i32, i32) {
    %c0_i32 = arith.constant 0 : i32
    %c0_i32_0 = arith.constant 0 : i32
    return %arg0, %c0_i32 : i32, i32
  }
  func.func @transform_1(%arg0: i32, %arg1: memref<1xi32, #tpu.memory_space<smem>>) -> (i32, i32) {
    %c0_i32 = arith.constant 0 : i32
    %c0_i32_0 = arith.constant 0 : i32
    %c0_i32_1 = arith.constant 0 : i32
    return %c0_i32, %c0_i32_0 : i32, i32
  }
  func.func @transform_2(%arg0: i32, %arg1: memref<1xi32, #tpu.memory_space<smem>>) -> (i32, i32) {
    %c0_i32 = arith.constant 0 : i32
    %c0_i32_0 = arith.constant 0 : i32
    %c0_i32_1 = arith.constant 0 : i32
    return %c0_i32, %c0_i32_0 : i32, i32
  }
  func.func @transform_3(%arg0: i32, %arg1: memref<1xi32, #tpu.memory_space<smem>>) -> (i32, i32) {
    %c0_i32 = arith.constant 0 : i32
    %c0_i32_0 = arith.constant 0 : i32
    %c0_i32_1 = arith.constant 0 : i32
    return %c0_i32, %c0_i32_0 : i32, i32
  }
  func.func @transform_4(%arg0: i32, %arg1: memref<1xi32, #tpu.memory_space<smem>>) -> (i32, i32) {
    %c0_i32 = arith.constant 0 : i32
    %c0_i32_0 = arith.constant 0 : i32
    %c0_i32_1 = arith.constant 0 : i32
    return %c0_i32, %c0_i32_0 : i32, i32
  }
  func.func @transform_5(%arg0: i32, %arg1: memref<1xi32, #tpu.memory_space<smem>>) -> (i32, i32) {
    %c0_i32 = arith.constant 0 : i32
    %c0_i32_0 = arith.constant 0 : i32
    %c0_i32_1 = arith.constant 0 : i32
    return %c0_i32, %c0_i32_0 : i32, i32
  }
  func.func @transform_6(%arg0: i32, %arg1: memref<1xi32, #tpu.memory_space<smem>>) -> (i32, i32) {
    %c0_i32 = arith.constant 0 : i32
    %c0_i32_0 = arith.constant 0 : i32
    %c0_i32_1 = arith.constant 0 : i32
    return %c0_i32, %c0_i32_0 : i32, i32
  }
  func.func @transform_7(%arg0: i32, %arg1: memref<1xi32, #tpu.memory_space<smem>>) -> (i32, i32) {
    %c0_i32 = arith.constant 0 : i32
    %c0_i32_0 = arith.constant 0 : i32
    return %c0_i32, %arg0 : i32, i32
  }
}

</mosaic_0001>

<bundles_post_ra>
// kernel: tpu_custom_call.1
= control target key start
LH: loop header
LB: loop body
LE: loop exit
PB: predicated region body
PF: predicated region fallthrough
CT: control target
= control target key end

     0   :  { %s619_s0 = inlined_call_operand.<no memory space> [shape: s32[1], index: 0, kind: input, shape index: {}]   ;;  %s620_s1 = inlined_call_operand.vmem [shape: f32[32,1], index: 1, kind: input, shape index: {}]   ;;  %s621_s2 = inlined_call_operand.vmem [shape: f32[1,64], index: 2, kind: input, shape index: {}]   ;;  %s622_s3 = inlined_call_operand.vmem [shape: f32[1,64], index: 3, kind: input, shape index: {}]   ;;  %s623_s4 = inlined_call_operand.hbm [shape: f32[64,64], index: 4, kind: input, shape index: {}]   ;;  %s624_s5 = inlined_call_operand.vmem [shape: f32[1,64], index: 5, kind: input, shape index: {}]   ;;  %s625_s6 = inlined_call_operand.vmem [shape: f32[1,64], index: 6, kind: input, shape index: {}]   ;;  %s626_s7 = inlined_call_operand.<no memory space> [shape: f32[1,1], index: 7, kind: input, shape index: {}]   ;;  %s627_s8 = inlined_call_operand.hbm [shape: f32[1,32], index: 8, kind: output, shape index: {}]  }
   0x1   :  { %v14_v0 = vstv %s626_s7 }
   0x2   :  { %15 = vst [vmem:[#allocation4] sm:$0x1] %v14_v0 }
   0x3   :  { %16 = vsyncpa [#allocation6], 0 }
   0x4   :  { %17 = vsyncpa [#allocation7], 0  ;;  %s489_s29 = smov [#allocation5]   ;;  %s441_s11 = scalar_lea.hbm %s623_s4, 1024 }
   0x5   :  { %s29_s30 = sshll.u32 %s489_s29, 4  ;;  %p442_p0 = scmp.ne.s32.totalorder %s623_s4, %s441_s11  ;;  %s30_s30 = int_to_ptr.vmem [resolvable:$true] %s29_s30 }
   0x6   :  { %p445_p1 = scmp.lt.u32.totalorder %s441_s11, %s623_s4 }
   0x8   :  { %p447_p2 = pnand %p445_p1, %p442_p0 }
   0xa   :  { %450 = shalt.err (!%p447_p2)
}
   0xb   :  { %s451_s7 = scalar_lea.vmem %s30_s30, 1024  ;;  %p456_p4 = scmp.lt.s32.totalorder %s30_s30, %s30_s30 }
   0xc   :  { %p452_p3 = scmp.ne.s32.totalorder %s30_s30, %s451_s7  ;;  %p457_p5 = scmp.lt.s32.totalorder %s451_s7, %s451_s7 }
   0xe   :  { %p458_p6 = por %p457_p5, %p456_p4 }
  0x10   :  { %p459_p7 = pnand %p458_p6, %p452_p3 }
  0x12   :  { %462 = shalt.err (!%p459_p7)
}
  0x13   :  { %s490_s16 = smov 128   ;;  %s491_s17 = smov 8  }
  0x14   :  { %35 = dma.hbm_to_vmem [thread:$0]  %s623_s4, 1024, %s30_s30, [#allocation6], %s490_s16, %s490_s16, %s491_s17  }
  0x15   :  { %485 = dma.done.wait [#allocation6], 1024  }
  0x16   :  { %486 = vsyncadd [#allocation6], 4294966272  ;;  %v492_v1 = vmov 0   ;;  %v47_v2 = vld [vmem:[%s620_s1 + $0x10] sm:$0xff]  ;;  %v45_v3 = vld [vmem:[%s620_s1] sm:$0xff]  ;;  %vm110_vm0 = vcmask 523264   ;;  %v212_v36 = vlaneseq  ;;  %v235_v48 = vstv %s619_s0 }
  0x17   :  { %440 = vset.pattern.permute.xlu1 %v492_v1  ;;  %439 = vset.pattern.permute.xlu0 %v492_v1  ;;  %v48_v4 = vld [vmem:[%s620_s1 + $0x18] sm:$0xff]  ;;  %v95_v5 = vld [vmem:[#allocation5] sm:$0xff]  ;;  %v96_v6 = vld [vmem:[#allocation5 + $0x8] sm:$0xff]  ;;  %vm334_vm5 = vcmask 130112   ;;  %vm341_vm6 = vcmask 195712   ;;  %vm348_vm7 = vcmask 261312  }
  0x18   :  { %62 = vperm.xlu1 %440, %v47_v2   ;;  %52 = vperm.xlu0 %439, %v45_v3   ;;  %v46_v7 = vld [vmem:[%s620_s1 + $0x8] sm:$0xff]  ;;  %v410_v8 = vpack.c.bf16 %v96_v6, %v95_v5  ;;  %v97_v9 = vld [vmem:[#allocation5 + $0x10] sm:$0xff]  ;;  %v98_v10 = vld [vmem:[#allocation5 + $0x18] sm:$0xff]  ;;  %v576_v37 = vshrl.u32 %v212_v36, 7  ;;  %v579_v39 = vand.u32 127, %v212_v36  ;;  %vm351_vm8 = vcmask 253952  }
  0x19   :  { %v414_v11 = vpack.c.bf16 %v98_v10, %v97_v9  ;;  %v99_v12 = vld [vmem:[#allocation5 + $0x20] sm:$0xff]  ;;  %v100_v13 = vld [vmem:[#allocation5 + $0x28] sm:$0xff]  ;;  %v101_v15 = vld [vmem:[#allocation5 + $0x30] sm:$0xff] }
  0x1a   :  { %411 = vmatprep.subr.bf16.mxu0 %v410_v8  ;;  %426 = vmatprep.subr.bf16.mxu1 %v410_v8  ;;  %v418_v14 = vpack.c.bf16 %v100_v13, %v99_v12  ;;  %v102_v16 = vld [vmem:[#allocation5 + $0x38] sm:$0xff]  ;;  %v214_v38 = vadd.s32 8, %v576_v37  ;;  %v215_v40 = vadd.s32 16, %v576_v37  ;;  %v229_v42 = vmul.u32 40503, %v579_v39 }
  0x1b   :  { %413 = vmatpush3.bf16.msra.mxu0 %v410_v8  ;;  %430 = vmatpush3.bf16.msra.mxu1 %v410_v8  ;;  %v422_v17 = vpack.c.bf16 %v102_v16, %v101_v15  ;;  %v368_v18 = vld [vmem:[%s621_s2] ss:$0 sm:$0xff]  ;;  %v216_v43 = vadd.s32 24, %v576_v37  ;;  %v225_v44 = vmul.u32 65539, %v576_v37 }
  0x1c   :  { %67 = vperm.xlu1 %440, %v48_v4   ;;  %57 = vperm.xlu0 %439, %v46_v7   ;;  %v369_v21 = vld [vmem:[%s622_s3] ss:$0 sm:$0xff]  ;;  %v226_v41 = vmul.u32 65539, %v214_v38  ;;  %v227_v45 = vmul.u32 65539, %v215_v40 }
  0x1d   :  { %415 = vmatprep.subr.bf16.mxu0 %v414_v11  ;;  %427 = vmatprep.subr.bf16.mxu1 %v414_v11  ;;  %v228_v47 = vmul.u32 65539, %v216_v43  ;;  %v230_v49 = vadd.s32 %v229_v42, %v225_v44  ;;  %v375_v38 = vld [vmem:[%s625_s6] ss:$0 sm:$0xff]  ;;  %s493_s6 = smov [#allocation8]  }
  0x1e   :  { %v231_v46 = vadd.s32 %v229_v42, %v226_v41  ;;  %v232_v50 = vadd.s32 %v229_v42, %v227_v45  ;;  %s359_s10 = sshll.u32 %s493_s6, 4  ;;  %s360_s10 = int_to_ptr.vmem [resolvable:$true] %s359_s10 }
  0x1f   :  { %417 = vmatpush3.bf16.msra.mxu0 %v414_v11  ;;  %431 = vmatpush3.bf16.msra.mxu1 %v414_v11  ;;  %v233_v52 = vadd.s32 %v229_v42, %v228_v47  ;;  %v236_v53 = vadd.s32 %v235_v48, %v230_v49  ;;  %s463_s11 = scalar_lea.vmem %s360_s10, 16  ;;  %s467_s12 = scalar_lea.vmem %s360_s10, 32 }
  0x20   :  { %419 = vmatprep.subr.bf16.mxu0 %v418_v14  ;;  %428 = vmatprep.subr.bf16.mxu1 %v418_v14  ;;  %v237_v51 = vadd.s32 %v235_v48, %v231_v46  ;;  %v238_v54 = vadd.s32 %v235_v48, %v232_v50  ;;  %p464_p8 = scmp.ne.s32.totalorder %s360_s10, %s463_s11  ;;  %p468_p9 = scmp.lt.s32.totalorder %s360_s10, %s360_s10 }
  0x21   :  { %v239_v56 = vadd.s32 %v235_v48, %v233_v52  ;;  %v240_v57 = vshrl.u32 %v236_v53, 16  ;;  %p469_p10 = scmp.lt.s32.totalorder %s467_s12, %s463_s11 }
  0x22   :  { %v241_v55 = vshrl.u32 %v237_v51, 16  ;;  %v242_v58 = vshrl.u32 %v238_v54, 16 }
  0x23   :  { %421 = vmatpush3.bf16.msra.mxu0 %v418_v14  ;;  %432 = vmatpush3.bf16.msra.mxu1 %v418_v14  ;;  %v243_v60 = vshrl.u32 %v239_v56, 16  ;;  %v244_v61 = vxor.u32 %v240_v57, %v236_v53  ;;  %p470_p11 = por %p469_p10, %p468_p9 }
  0x24   :  { %423 = vmatprep.subr.bf16.mxu0 %v422_v17  ;;  %429 = vmatprep.subr.bf16.mxu1 %v422_v17  ;;  %v245_v59 = vxor.u32 %v241_v55, %v237_v51  ;;  %v246_v62 = vxor.u32 %v242_v58, %v238_v54 }
  0x25   :  { %v247_v0 = vxor.u32 %v243_v60, %v239_v56  ;;  %v248_v1 = vmul.u32 2246822507, %v244_v61  ;;  %v307_v56 = vld [vmem:[#allocation4] sm:$0x1]  ;;  %v329_v60 = vadd.s32 4294967288, %v579_v39  ;;  %v336_v61 = vadd.s32 4294967280, %v579_v39  ;;  %p471_p12 = pnand %p470_p11, %p464_p8 }
  0x26   :  { %v249_v63 = vmul.u32 2246822507, %v245_v59  ;;  %v250_v2 = vmul.u32 2246822507, %v246_v62  ;;  %v315_v59 = vsub.s32 0, %v576_v37 }
  0x27   :  { %425 = vmatpush3.bf16.msra.mxu0 %v422_v17  ;;  %433 = vmatpush3.bf16.msra.mxu1 %v422_v17  ;;  %v251_v4 = vmul.u32 2246822507, %v247_v0  ;;  %v252_v5 = vshrl.u32 %v248_v1, 13  ;;  %v327_v0 = vsub.s32 %v579_v39, %v576_v37 }
  0x28   :  { %v253_v3 = vshrl.u32 %v249_v63, 13  ;;  %v254_v6 = vshrl.u32 %v250_v2, 13 }
  0x29   :  { %v255_v8 = vshrl.u32 %v251_v4, 13  ;;  %v256_v9 = vxor.u32 %v252_v5, %v248_v1  ;;  %v332_v1 = vsub.s32 %v329_v60, %v576_v37 }
  0x2a   :  { %v257_v7 = vxor.u32 %v253_v3, %v249_v63  ;;  %v258_v10 = vxor.u32 %v254_v6, %v250_v2  ;;  %v343_v63 = vadd.s32 4294967272, %v579_v39  ;;  %v339_v3 = vsub.s32 %v336_v61, %v576_v37 }
  0x2b   :  { %v259_v12 = vxor.u32 %v255_v8, %v251_v4  ;;  %v260_v13 = vmul.u32 3266489909, %v256_v9 }
  0x2c   :  { %v261_v11 = vmul.u32 3266489909, %v257_v7  ;;  %v262_v14 = vmul.u32 3266489909, %v258_v10  ;;  %v346_v8 = vsub.s32 %v343_v63, %v576_v37 }
  0x2d   :  { %v263_v16 = vmul.u32 3266489909, %v259_v12  ;;  %v264_v17 = vshrl.u32 %v260_v13, 16 }
  0x2e   :  { %v265_v15 = vshrl.u32 %v261_v11, 16 }
  0x97   :  { %v63_v19 = vpop.permute.xlu1 %62  ;;  %v53_v20 = vpop.permute.xlu0 %52 }
  0x98   :  { %v78_v22 = vmul.f32 %v368_v18, %v63_v19  ;;  %v76_v23 = vmul.f32 %v368_v18, %v53_v20  ;;  %v370_v19 = vld [vmem:[%s624_s5] ss:$0 sm:$0xff] }
  0x9a   :  { %v87_v24 = vadd.f32 %v369_v21, %v76_v23  ;;  %v89_v25 = vadd.f32 %v369_v21, %v78_v22  ;;  %v269_v22 = vxor.u32 %v265_v15, %v261_v11  ;;  %v267_v23 = vshrl.u32 %v263_v16, 16 }
  0x9b   :  { %v68_v26 = vpop.permute.xlu1 %67  ;;  %v58_v27 = vpop.permute.xlu0 %57 }
  0x9c   :  { %v79_v28 = vmul.f32 %v368_v18, %v68_v26  ;;  %v77_v29 = vmul.f32 %v368_v18, %v58_v27  ;;  %v91_v30 = vmax.f32 %v87_v24, 0.0  ;;  %v93_v31 = vmax.f32 %v89_v25, 0.0 }
  0x9d   :  { %v266_v18 = vshrl.u32 %v262_v14, 16  ;;  %vm273_vm1 = vcmp.ge.u32.totalorder %v269_v22, 2147483648  ;;  %v271_v40 = vxor.u32 %v267_v23, %v263_v16 }
  0x9e   :  { %v90_v32 = vadd.f32 %v369_v21, %v79_v28  ;;  %v88_v33 = vadd.f32 %v369_v21, %v77_v29  ;;  %404 = vmatprep.mubr.msk.f32.mxu0 %vm110_vm0, %v91_v30  ;;  %407 = vmatprep.mubr.msk.f32.mxu1 %vm110_vm0, %v93_v31  ;;  %v268_v28 = vxor.u32 %v264_v17, %v260_v13 }
  0x9f   :  { %v270_v29 = vxor.u32 %v266_v18, %v262_v14  ;;  %vm275_vm4 = vcmp.ge.u32.totalorder %v271_v40, 2147483648 }
  0xa0   :  { %v94_v34 = vmax.f32 %v90_v32, 0.0  ;;  %v92_v35 = vmax.f32 %v88_v33, 0.0  ;;  %vm272_vm2 = vcmp.ge.u32.totalorder %v268_v28, 2147483648 }
  0xa1   :  { %vm274_vm3 = vcmp.ge.u32.totalorder %v270_v29, 2147483648 }
  0xa2   :  { %405 = vmatmul.mubr.msk.f32.vlgmr.msra.gmra.mrb[0].mxu0 %vm110_vm0, %v92_v35  ;;  %408 = vmatmul.mubr.msk.f32.vlgmr.msra.gmra.mrb[0].mxu1 %vm110_vm0, %v94_v34 }
 0x175   :  { %v406_v20 = vpop.f32.mrb[0].mxu0  ;;  %v409_v21 = vpop.f32.mrb[0].mxu1 }
 0x176   :  { %v195_v24 = vadd.f32 %v406_v20, %v370_v19  ;;  %v205_v25 = vadd.f32 %v409_v21, %v370_v19  ;;  %v189_v26 = vpop.f32.mrb[1].mxu0  ;;  %v199_v27 = vpop.f32.mrb[1].mxu1 }
 0x177   :  { %v190_v30 = vadd.f32 %v370_v19, %v189_v26  ;;  %v200_v31 = vadd.f32 %v370_v19, %v199_v27 }
 0x178   :  { %v209_v32 = vmax.f32 %v195_v24, 0.0  ;;  %v211_v33 = vmax.f32 %v205_v25, 0.0 }
 0x179   :  { %v208_v34 = vmax.f32 %v190_v30, 0.0  ;;  %v210_v35 = vmax.f32 %v200_v31, 0.0 }
 0x17a   :  { %v277_v36 = vmul.f32 2.0, %v209_v32  ;;  %v279_v44 = vmul.f32 2.0, %v211_v33 }
 0x17b   :  { %v276_v41 = vmul.f32 2.0, %v208_v34  ;;  %v278_v42 = vmul.f32 2.0, %v210_v35 }
 0x17c   :  { %v281_v43 = vsel %vm273_vm1, %v277_v36, 0.0  ;;  %v283_v52 = vsel %vm275_vm4, %v279_v44, 0.0 }
 0x17d   :  { %v292_v45 = vmul.f32 %v375_v38, %v281_v43  ;;  %v280_v46 = vsel %vm272_vm2, %v276_v41, 0.0  ;;  %v282_v47 = vsel %vm274_vm3, %v278_v42, 0.0  ;;  %v294_v54 = vmul.f32 %v375_v38, %v283_v52 }
 0x17e   :  { %v291_v48 = vmul.f32 %v375_v38, %v280_v46  ;;  %v293_v51 = vmul.f32 %v375_v38, %v282_v47 }
 0x17f   :  { %v298_v49 = vsel %vm110_vm0, %v292_v45, 0.0  ;;  %v304_v55 = vsel %vm110_vm0, %v294_v54, 0.0 }
 0x180   :  { %299 = vadd.xlane.f32.xlu1 %v298_v49  ;;  %v295_v50 = vsel %vm110_vm0, %v291_v48, 0.0  ;;  %v301_v53 = vsel %vm110_vm0, %v293_v51, 0.0 }
 0x181   :  { %296 = vadd.xlane.f32.xlu0 %v295_v50 }
 0x185   :  { %302 = vadd.xlane.f32.xlu0 %v301_v53 }
 0x189   :  { %305 = vadd.xlane.f32.xlu0 %v304_v55 }
 0x191   :  { %310 = vperm.xlu1 %440, %v307_v56  }
 0x20d   :  { %v300_v57 = vpop.xlane.xlu1 %299 }
 0x20e   :  { %v297_v58 = vpop.xlane.xlu0 %296 }
 0x211   :  { %v311_v62 = vpop.permute.xlu1 %310 }
 0x212   :  { %v316_v2 = vrot.slane %v311_v62, %v315_v59  ;;  %v303_v4 = vpop.xlane.xlu0 %302 }
 0x214   :  { %v317_v5 = vadd.f32 %v316_v2, %v297_v58  ;;  %v318_v6 = vadd.f32 %v316_v2, %v300_v57  ;;  %v319_v7 = vadd.f32 %v316_v2, %v303_v4 }
 0x216   :  { %v328_v9 = vrot.slane %v317_v5, %v327_v0  ;;  %v333_v10 = vrot.slane %v318_v6, %v332_v1  ;;  %v340_v11 = vrot.slane %v319_v7, %v339_v3  ;;  %v306_v12 = vpop.xlane.xlu0 %305 }
 0x217   :  { %v320_v13 = vadd.f32 %v316_v2, %v306_v12 }
 0x218   :  { %v335_v39 = vsel %vm334_vm5, %v333_v10, %v328_v9 }
 0x219   :  { %v347_v14 = vrot.slane %v320_v13, %v346_v8  ;;  %v342_v15 = vsel %vm341_vm6, %v340_v11, %v335_v39 }
 0x21b   :  { %v349_v16 = vsel %vm348_vm7, %v347_v14, %v342_v15 }
 0x21c   :  { %352 = vst.msk [vmem:[#allocation8] sm:$0x1] %vm351_vm8, %v349_v16 }
 0x21d   :  { %474 = shalt.err (!%p471_p12)
}
 0x21e   :  { %s475_s15 = scalar_lea.hbm %s627_s8, 16 }
 0x21f   :  { %p476_p13 = scmp.ne.s32.totalorder %s627_s8, %s475_s15  ;;  %p479_p0 = scmp.lt.u32.totalorder %s475_s15, %s627_s8 }
 0x221   :  { %p481_p1 = pnand %p479_p0, %p476_p13 }
 0x223   :  { %484 = shalt.err (!%p481_p1)
}
 0x224   :  { %362 = dma.vmem_to_hbm [thread:$0]  %s360_s10, 16, %s627_s8, [#allocation7]  }
 0x225   :  { %487 = dma.done.wait [#allocation7], 16  }
 0x226   :  { %488 = vsyncadd [#allocation7], 4294967280 }
 0x227   :  { %366 = vsyncpa [#allocation6], 1 }
 0x228   :  { %367 = vsyncpa [#allocation7], 1 }

</bundles_post_ra>
